<compile_context>
chip_gen: v6e
topology: v6e:2x2x1
jax: 0.10.0
libtpu: 0.0.40
codegen_flags: <defaults>
</compile_context>

<pallas_src>
import jax
import jax.numpy as jnp
from jax.experimental import pallas as pl
from jax.experimental.pallas import tpu as pltpu


def _round_up(x, m):
    return ((x + m - 1) // m) * m


def mlp_kernel(x_ref, w1_ref, b1_ref, w2_ref, b2_ref, o_ref):
    x = x_ref[...]                                                        # (TB, 20)
    h = jnp.dot(x, w1_ref[...], preferred_element_type=jnp.float32) + b1_ref[...]  # (TB, 256)
    h = jnp.maximum(h, 0.0)
    out = jnp.dot(h, w2_ref[...], preferred_element_type=jnp.float32) + b2_ref[...]  # (TB, 10)
    o_ref[...] = out.astype(o_ref.dtype)


def original_mlp(x, w1, b1, w2, b2, *, block_b=8192):
    """Fused MLP forward. x: (B, 20) f32. Returns (B, 10) f32."""
    B, F_in = x.shape
    H = w1.shape[1]     # 256
    N = w2.shape[1]     # 10

    # Batch tile: multiple of 8 (sublane), at most ~half the batch so the grid has >=2
    # steps when B is large (v7x two-TC sharding), capped by block_b.
    half_b = -(-B // 2)
    TB = min(block_b, max(8, _round_up(half_b, 8)))
    grid = (pl.cdiv(B, TB),)

    # VMEM footprint estimate (f32 bytes). x/out tiles are lane-padded to 128 in VMEM and
    # double-buffered; hidden intermediate h is (TB, 256); weights are resident once.
    vmem_est = 4 * (
        2 * TB * 128        # x tile, double-buffered (20 lanes pad to 128 in VMEM)
        + 2 * TB * 128      # out tile, double-buffered (10 lanes pad to 128 in VMEM)
        + TB * H            # hidden intermediate h (f32)
        + 32 * H            # w1 (20 sublanes pad up)
        + H * 128           # w2 (10 lanes pad to 128)
        + 2 * H + 2 * 128   # biases
    )
    # Raise v5e's 16 MiB scoped default; stay well under v7x's 64 MiB physical VMEM.
    vmem_limit = int(min(max(vmem_est + (4 << 20), 32 << 20), 56 << 20))

    out = pl.pallas_call(
        mlp_kernel,
        out_shape=jax.ShapeDtypeStruct((B, N), jnp.float32),
        grid_spec=pltpu.PrefetchScalarGridSpec(
            num_scalar_prefetch=0,
            grid=grid,
            in_specs=[
                pl.BlockSpec((TB, F_in), lambda i: (i, 0)),   # x tile, pipelined over batch
                pl.BlockSpec((F_in, H), lambda i: (0, 0)),    # w1, VMEM-resident
                pl.BlockSpec((1, H), lambda i: (0, 0)),       # b1, VMEM-resident
                pl.BlockSpec((H, N), lambda i: (0, 0)),       # w2, VMEM-resident (unpadded)
                pl.BlockSpec((1, N), lambda i: (0, 0)),       # b2, VMEM-resident (unpadded)
            ],
            out_specs=pl.BlockSpec((TB, N), lambda i: (i, 0)),
        ),
        compiler_params=pltpu.CompilerParams(
            dimension_semantics=("parallel",),   # batch tiles shard across TCs on v7x
            vmem_limit_bytes=vmem_limit,
        ),
    )(x, w1, b1, w2, b2)

    return out


def init_params(key):
    """Deterministic init mimicking PyTorch nn.Linear default (U(-1/sqrt(fan_in), +))."""
    k1, k2, k3, k4 = jax.random.split(key, 4)
    in1, hid, out = 20, 256, 10
    bound1 = 1.0 / jnp.sqrt(in1)
    bound2 = 1.0 / jnp.sqrt(hid)
    # Stored as (in, out): PyTorch's W is (out, in) and computes x @ W.T == x @ (our w).
    w1 = jax.random.uniform(k1, (in1, hid), jnp.float32, -bound1, bound1)
    b1 = jax.random.uniform(k2, (1, hid), jnp.float32, -bound1, bound1)
    w2 = jax.random.uniform(k3, (hid, out), jnp.float32, -bound2, bound2)
    b2 = jax.random.uniform(k4, (1, out), jnp.float32, -bound2, bound2)
    return w1, b1, w2, b2


if __name__ == "__main__":
    key = jax.random.PRNGKey(0)
    k_x, k_p = jax.random.split(key)

    B = 8
    x = jax.random.normal(k_x, (B, 20), jnp.float32)
    w1, b1, w2, b2 = init_params(k_p)

    y = original_mlp(x, w1, b1, w2, b2)
    y = jax.block_until_ready(y)

    # Reference check in plain JAX (same math as the PyTorch forward).
    y_ref = jnp.maximum(x @ w1 + b1, 0.0) @ w2 + b2
    assert y.shape == (B, 10)
    assert jnp.allclose(y, y_ref, atol=1e-5, rtol=1e-5)

    # Also exercise a multi-step, non-divisible batch to check the ragged last block path.
    B2 = 37
    x2 = jax.random.normal(k_x, (B2, 20), jnp.float32)
    y2 = jax.block_until_ready(original_mlp(x2, w1, b1, w2, b2, block_b=16))
    y2_ref = jnp.maximum(x2 @ w1 + b1, 0.0) @ w2 + b2
    assert y2.shape == (B2, 10)
    assert jnp.allclose(y2, y2_ref, atol=1e-5, rtol=1e-5)

    print("KERNEL_OK")
</pallas_src>

<mosaic_0001>
module attributes {stable_mosaic.version = 11 : i64} {
  func.func @mlp_kernel(%arg0: i32, %arg1: memref<8x20xf32, #tpu.memory_space<vmem>>, %arg2: memref<20x256xf32, #tpu.memory_space<vmem>>, %arg3: memref<1x256xf32, #tpu.memory_space<vmem>>, %arg4: memref<256x10xf32, #tpu.memory_space<vmem>>, %arg5: memref<1x10xf32, #tpu.memory_space<vmem>>, %arg6: memref<8x10xf32, #tpu.memory_space<vmem>>) attributes {dimension_semantics = [#tpu.dimension_semantics<parallel>], iteration_bounds = array<i64: 1>, scalar_prefetch = 0 : i64, scratch_operands = 0 : i64, tpu.core_type = #tpu.core_type<tc>, window_params = [{transform_indices = @transform_0, window_bounds = array<i64: 8, 20>}, {pipeline_mode = #tpu.pipeline_mode<synchronous>, transform_indices = @transform_1, window_bounds = array<i64: 20, 256>}, {pipeline_mode = #tpu.pipeline_mode<synchronous>, transform_indices = @transform_2, window_bounds = array<i64: 1, 256>}, {pipeline_mode = #tpu.pipeline_mode<synchronous>, transform_indices = @transform_3, window_bounds = array<i64: 256, 10>}, {pipeline_mode = #tpu.pipeline_mode<synchronous>, transform_indices = @transform_4, window_bounds = array<i64: 1, 10>}, {transform_indices = @transform_5, window_bounds = array<i64: 8, 10>}]} {
    %c0 = arith.constant 0 : index
    %c0_0 = arith.constant 0 : index
    %0 = vector.load %arg1[%c0, %c0_0] : memref<8x20xf32, #tpu.memory_space<vmem>>, vector<8x20xf32>
    %c0_1 = arith.constant 0 : index
    %c0_2 = arith.constant 0 : index
    %1 = vector.load %arg2[%c0_1, %c0_2] : memref<20x256xf32, #tpu.memory_space<vmem>>, vector<20x256xf32>
    %cst = arith.constant dense<0.000000e+00> : vector<8x256xf32>
    %2 = tpu.matmul %0, %1, %cst {dimension_numbers = #tpu.dot_dimension_numbers<[1], [0], [0], [1], [0, 0, 1, 1], [], []>} : vector<8x20xf32>, vector<20x256xf32>, vector<8x256xf32> -> vector<8x256xf32>
    %c0_3 = arith.constant 0 : index
    %c0_4 = arith.constant 0 : index
    %3 = vector.load %arg3[%c0_3, %c0_4] : memref<1x256xf32, #tpu.memory_space<vmem>>, vector<1x256xf32>
    %4 = vector.broadcast %3 : vector<1x256xf32> to vector<8x256xf32>
    %5 = arith.addf %2, %4 : vector<8x256xf32>
    %cst_5 = arith.constant 0.000000e+00 : f32
    %6 = vector.broadcast %cst_5 : f32 to vector<8x256xf32>
    %7 = arith.maximumf %5, %6 : vector<8x256xf32>
    %c0_6 = arith.constant 0 : index
    %c0_7 = arith.constant 0 : index
    %8 = vector.load %arg4[%c0_6, %c0_7] : memref<256x10xf32, #tpu.memory_space<vmem>>, vector<256x10xf32>
    %cst_8 = arith.constant dense<0.000000e+00> : vector<8x10xf32>
    %9 = tpu.matmul %7, %8, %cst_8 {dimension_numbers = #tpu.dot_dimension_numbers<[1], [0], [0], [1], [0, 0, 1, 1], [], []>} : vector<8x256xf32>, vector<256x10xf32>, vector<8x10xf32> -> vector<8x10xf32>
    %c0_9 = arith.constant 0 : index
    %c0_10 = arith.constant 0 : index
    %10 = vector.load %arg5[%c0_9, %c0_10] : memref<1x10xf32, #tpu.memory_space<vmem>>, vector<1x10xf32>
    %11 = vector.broadcast %10 : vector<1x10xf32> to vector<8x10xf32>
    %12 = arith.addf %9, %11 : vector<8x10xf32>
    %c0_11 = arith.constant 0 : index
    %c0_12 = arith.constant 0 : index
    %13 = vector.load %arg6[%c0_11, %c0_12] : memref<8x10xf32, #tpu.memory_space<vmem>>, vector<8x10xf32>
    tpu.vector_store %arg6[%c0_11, %c0_12], %12 {strides = array<i32>} : memref<8x10xf32, #tpu.memory_space<vmem>>, vector<8x10xf32>,
    return
  }
  func.func @transform_0(%arg0: i32) -> (i32, i32) {
    %c0_i32 = arith.constant 0 : i32
    %c0_i32_0 = arith.constant 0 : i32
    return %arg0, %c0_i32 : i32, i32
  }
  func.func @transform_1(%arg0: i32) -> (i32, i32) {
    %c0_i32 = arith.constant 0 : i32
    %c0_i32_0 = arith.constant 0 : i32
    %c0_i32_1 = arith.constant 0 : i32
    return %c0_i32, %c0_i32_0 : i32, i32
  }
  func.func @transform_2(%arg0: i32) -> (i32, i32) {
    %c0_i32 = arith.constant 0 : i32
    %c0_i32_0 = arith.constant 0 : i32
    %c0_i32_1 = arith.constant 0 : i32
    return %c0_i32, %c0_i32_0 : i32, i32
  }
  func.func @transform_3(%arg0: i32) -> (i32, i32) {
    %c0_i32 = arith.constant 0 : i32
    %c0_i32_0 = arith.constant 0 : i32
    %c0_i32_1 = arith.constant 0 : i32
    return %c0_i32, %c0_i32_0 : i32, i32
  }
  func.func @transform_4(%arg0: i32) -> (i32, i32) {
    %c0_i32 = arith.constant 0 : i32
    %c0_i32_0 = arith.constant 0 : i32
    %c0_i32_1 = arith.constant 0 : i32
    return %c0_i32, %c0_i32_0 : i32, i32
  }
  func.func @transform_5(%arg0: i32) -> (i32, i32) {
    %c0_i32 = arith.constant 0 : i32
    %c0_i32_0 = arith.constant 0 : i32
    return %arg0, %c0_i32 : i32, i32
  }
}

</mosaic_0001>

<bundles_post_ra>
// kernel: tpu_custom_call.1
= control target key start
LH: loop header
LB: loop body
LE: loop exit
PB: predicated region body
PF: predicated region fallthrough
CT: control target
= control target key end

     0   :  { %vm44_vm0 = vcmask 1043456   ;;  %v312_v5 = vmov 0.0   ;;  %vm40_vm1 = vcmask 162816   ;;  %s470_s0 = inlined_call_operand.vmem [shape: f32[8,20], index: 0, kind: input, shape index: {}]   ;;  %s471_s1 = inlined_call_operand.vmem [shape: f32[20,256], index: 1, kind: input, shape index: {}]   ;;  %s472_s2 = inlined_call_operand.vmem [shape: f32[1,256], index: 2, kind: input, shape index: {}]   ;;  %s473_s3 = inlined_call_operand.vmem [shape: f32[256,10], index: 3, kind: input, shape index: {}]   ;;  %s474_s4 = inlined_call_operand.vmem [shape: f32[1,10], index: 4, kind: input, shape index: {}]   ;;  %s475_s5 = inlined_call_operand.hbm [shape: f32[8,10], index: 5, kind: output, shape index: {}]  }
   0x1   :  { %v27_v0 = vld [vmem:[%s471_s1 + $0x28] sm:$0xf]  ;;  %v26_v1 = vld [vmem:[%s471_s1 + $0x20] sm:$0xf]  ;;  %v25_v2 = vld [vmem:[%s471_s1 + $0x18] sm:$0xff]  ;;  %115 = vmatprep.mubr.f32.mxu0 %v312_v5 }
   0x2   :  { %249 = vmatprep.subr.msk.mxu0 %vm44_vm0, %v27_v0  ;;  %v24_v3 = vld [vmem:[%s471_s1 + $0x10] sm:$0xff]  ;;  %v23_v4 = vld [vmem:[%s471_s1 + $0x8] sm:$0xff]  ;;  %v155_v6 = vld [vmem:[%s473_s3 + $0xf8] sm:$0xff] }
   0x3   :  { %250 = vmatpush1.msk.msra.mxu0 %vm44_vm0, %v26_v1  ;;  %v139_v7 = vld [vmem:[%s473_s3 + $0x78] sm:$0xff]  ;;  %v22_v8 = vld [vmem:[%s471_s1] sm:$0xff]  ;;  %253 = vmatprep.subr.mxu1 %v155_v6  ;;  %v154_v9 = vld [vmem:[%s473_s3 + $0xf0] sm:$0xff] }
   0x4   :  { %79 = vmatprep.subr.mxu0 %v25_v2  ;;  %v138_v10 = vld [vmem:[%s473_s3 + $0x70] sm:$0xff]  ;;  %v21_v11 = vld [vmem:[%s470_s0] sm:$0xff]  ;;  %254 = vmatpush3.msra.mxu1 %v139_v7  ;;  %v153_v12 = vld [vmem:[%s473_s3 + $0xe8] sm:$0xff] }
   0x5   :  { %80 = vmatpush1.msra.mxu0 %v24_v3  ;;  %255 = vmatprep.subr.mxu1 %v154_v9  ;;  %v137_v13 = vld [vmem:[%s473_s3 + $0x68] sm:$0xff]  ;;  %v152_v14 = vld [vmem:[%s473_s3 + $0xe0] sm:$0xff]  ;;  %v151_v16 = vld [vmem:[%s473_s3 + $0xd8] sm:$0xff] }
   0x6   :  { %81 = vmatprep.subr.mxu0 %v23_v4  ;;  %256 = vmatpush3.msra.mxu1 %v138_v10  ;;  %v136_v15 = vld [vmem:[%s473_s3 + $0x60] sm:$0xff]  ;;  %v135_v17 = vld [vmem:[%s473_s3 + $0x58] sm:$0xff]  ;;  %v150_v18 = vld [vmem:[%s473_s3 + $0xd0] sm:$0xff] }
   0x7   :  { %82 = vmatpush1.msra.mxu0 %v22_v8  ;;  %257 = vmatprep.subr.mxu1 %v153_v12 }
   0x8   :  { %251 = vmatmul.mubr.msk.f32.vlgmr.msra.gmra.mxu0 %vm40_vm1, %v21_v11  ;;  %258 = vmatpush3.msra.mxu1 %v137_v13 }
   0x9   :  { %259 = vmatprep.subr.mxu1 %v152_v14 }
   0xa   :  { %260 = vmatpush3.msra.mxu1 %v136_v15 }
   0xb   :  { %10 = vsyncpa [#allocation3], 0  ;;  %261 = vmatprep.subr.mxu1 %v151_v16  ;;  %v134_v19 = vld [vmem:[%s473_s3 + $0x50] sm:$0xff]  ;;  %v149_v20 = vld [vmem:[%s473_s3 + $0xc8] sm:$0xff]  ;;  %v30_v40 = vlaneseq  ;;  %s313_s19 = smov [#allocation2]   ;;  %vm233_vm2 = vcmask 80896  }
   0xc   :  { %262 = vmatpush3.msra.mxu1 %v135_v17  ;;  %v133_v21 = vld [vmem:[%s473_s3 + $0x48] sm:$0xff]  ;;  %v148_v22 = vld [vmem:[%s473_s3 + $0xc0] sm:$0xff]  ;;  %v147_v24 = vld [vmem:[%s473_s3 + $0xb8] sm:$0xff]  ;;  %s241_s0 = sshll.u32 %s313_s19, 4  ;;  %s242_s0 = int_to_ptr.vmem [resolvable:$true] %s241_s0 }
   0xd   :  { %263 = vmatprep.subr.mxu1 %v150_v18  ;;  %v132_v23 = vld [vmem:[%s473_s3 + $0x40] sm:$0xff]  ;;  %v131_v25 = vld [vmem:[%s473_s3 + $0x38] sm:$0xff]  ;;  %v146_v26 = vld [vmem:[%s473_s3 + $0xb0] sm:$0xff]  ;;  %v31_v41 = vshrl.u32 %v30_v40, 7  ;;  %p295_p1 = scmp.lt.s32.totalorder %s242_s0, %s242_s0 }
   0xe   :  { %264 = vmatpush3.msra.mxu1 %v134_v19  ;;  %v130_v27 = vld [vmem:[%s473_s3 + $0x30] sm:$0xff]  ;;  %v145_v28 = vld [vmem:[%s473_s3 + $0xa8] sm:$0xff]  ;;  %v144_v30 = vld [vmem:[%s473_s3 + $0xa0] sm:$0xff] }
   0xf   :  { %265 = vmatprep.subr.mxu1 %v149_v20  ;;  %v129_v29 = vld [vmem:[%s473_s3 + $0x28] sm:$0xff]  ;;  %v128_v31 = vld [vmem:[%s473_s3 + $0x20] sm:$0xff]  ;;  %v143_v32 = vld [vmem:[%s473_s3 + $0x98] sm:$0xff]  ;;  %v32_v42 = vsub.s32 0, %v31_v41  ;;  %v36_v44 = vsub.s32 1, %v31_v41 }
  0x10   :  { %266 = vmatpush3.msra.mxu1 %v133_v21  ;;  %v127_v33 = vld [vmem:[%s473_s3 + $0x18] sm:$0xff]  ;;  %v142_v34 = vld [vmem:[%s473_s3 + $0x90] sm:$0xff]  ;;  %v141_v36 = vld [vmem:[%s473_s3 + $0x88] sm:$0xff] }
  0x11   :  { %267 = vmatprep.subr.mxu1 %v148_v22  ;;  %v126_v35 = vld [vmem:[%s473_s3 + $0x10] sm:$0xff]  ;;  %v125_v37 = vld [vmem:[%s473_s3 + $0x8] sm:$0xff]  ;;  %v140_v38 = vld [vmem:[%s473_s3 + $0x80] sm:$0xff] }
  0x12   :  { %268 = vmatpush3.msra.mxu1 %v132_v23  ;;  %v124_v39 = vld [vmem:[%s473_s3] sm:$0xff] }
  0x13   :  { %269 = vmatprep.subr.mxu1 %v147_v24  ;;  %v28_v43 = vld [vmem:[%s472_s2] sm:$0x3]  ;;  %s290_s2 = scalar_lea.vmem %s242_s0, 128 }
  0x14   :  { %270 = vmatpush3.msra.mxu1 %v131_v25  ;;  %v33_v45 = vrot.slane %v28_v43, %v32_v42  ;;  %v37_v46 = vrot.slane %v28_v43, %v36_v44  ;;  %v252_v54 = vld [vmem:[%s474_s4] ss:$0 sm:$0xff]  ;;  %p291_p0 = scmp.ne.s32.totalorder %s242_s0, %s290_s2  ;;  %p296_p2 = scmp.lt.s32.totalorder %s290_s2, %s290_s2 }
  0x15   :  { %271 = vmatprep.subr.mxu1 %v146_v26 }
  0x16   :  { %272 = vmatpush3.msra.mxu1 %v130_v27  ;;  %p297_p3 = por %p296_p2, %p295_p1 }
  0x17   :  { %273 = vmatprep.subr.mxu1 %v145_v28 }
  0x18   :  { %274 = vmatpush3.msra.mxu1 %v129_v29  ;;  %p298_p4 = pnand %p297_p3, %p291_p0 }
  0x19   :  { %275 = vmatprep.subr.mxu1 %v144_v30 }
  0x1a   :  { %276 = vmatpush3.msra.mxu1 %v128_v31 }
  0x1b   :  { %277 = vmatprep.subr.mxu1 %v143_v32 }
  0x1c   :  { %278 = vmatpush3.msra.mxu1 %v127_v33 }
  0x1d   :  { %279 = vmatprep.subr.mxu1 %v142_v34 }
  0x1e   :  { %280 = vmatpush3.msra.mxu1 %v126_v35 }
  0x1f   :  { %281 = vmatprep.subr.mxu1 %v141_v36 }
  0x20   :  { %282 = vmatpush3.msra.mxu1 %v125_v37 }
  0x21   :  { %283 = vmatprep.subr.mxu1 %v140_v38 }
  0x22   :  { %284 = vmatpush3.msra.mxu1 %v124_v39 }
  0xc8   :  { %v117_v47 = vpop.f32.mrf.mxu0 }
  0xc9   :  { %v118_v48 = vadd.f32 %v117_v47, %v33_v45 }
  0xca   :  { %v119_v49 = vpop.f32.mrf.mxu0 }
  0xcb   :  { %v120_v50 = vadd.f32 %v119_v49, %v37_v46  ;;  %v122_v52 = vmax.f32 %v118_v48, 0.0 }
  0xcd   :  { %v123_v51 = vmax.f32 %v120_v50, 0.0 }
  0xcf   :  { %227 = vmatprep.mubr.f32.mxu1 %v123_v51 }
  0xd0   :  { %228 = vmatmul.mubr.f32.vlgmr.msra.gmra.mxu1 %v122_v52 }
 0x190   :  { %v285_v53 = vpop.f32.mrf.mxu1 }
 0x192   :  { %v286_v55 = vpop.f32.mrf.mxu1 }
 0x193   :  { %v287_v56 = vadd.f32 %v286_v55, %v285_v53 }
 0x195   :  { %v230_v57 = vadd.f32 %v287_v56, %v252_v54 }
 0x197   :  { %234 = vst.msk [vmem:[#allocation2] sm:$0xff] %vm233_vm2, %v230_v57 }
 0x198   :  { %301 = shalt.err (!%p298_p4)
}
 0x199   :  { %244 = dma.vmem_to_hbm [thread:$0]  %s242_s0, 128, %s475_s5, [#allocation3]  }
 0x19a   :  { %310 = dma.done.wait [#allocation3], 128  }
 0x19b   :  { %311 = vsyncadd [#allocation3], 4294967168 }
 0x19c   :  { %248 = vsyncpa [#allocation3], 1 }

</bundles_post_ra>
